<compile_context>
chip_gen: v7x
topology: tpu7x:2x2x1
jax: 0.10.0
libtpu: 0.0.40
codegen_flags: <defaults>
</compile_context>

<pallas_src>
import functools

import jax
import jax.numpy as jnp
from jax.experimental import pallas as pl
from jax.experimental.pallas import tpu as pltpu


def attn_kernel(x_ref, w1_ref, b1_ref, w2_ref, o_ref, *, bblk, seq, approx_recip):
    """One grid step: `bblk` batch elements = bblk*seq flattened rows.

    x_ref : (bblk*seq, D)  compute dtype (bf16 fast path), native row layout
    w1_ref: (D, nch)       compute dtype
    b1_ref: (1, nch)       f32
    w2_ref: (1, nch)       f32
    o_ref : (bblk, seq)    f32 attention weights
    """
    # Hidden layer: one MXU matmul on the native (rows, D) layout, f32 accum.
    h = jnp.dot(x_ref[...], w1_ref[...],
                preferred_element_type=jnp.float32)            # (rows, nch)
    h = jnp.maximum(h + b1_ref[...], 0.0)                      # bias + ReLU (VPU)

    # Output projection nch -> 1: VPU multiply + one vectorized lane reduce
    # (an MXU (rows,24)@(24,1) matmul would be nearly empty; XLU has slack).
    # b2 is omitted: softmax is shift-invariant, a scalar bias cancels exactly.
    s = jnp.sum(h * w2_ref[...], axis=-1, keepdims=True)       # (rows, 1)

    # Vectorized per-batch softmax over seq: one tiny relayout of the score
    # block, then row-wise (lane-axis) reductions.  No Python unrolling, no
    # per-row slices, no concatenate.
    s = s.reshape(bblk, seq)                                    # (bblk, seq)
    m = jnp.max(s, axis=-1, keepdims=True)
    e = jnp.exp(s - m)                                          # EUP
    denom = jnp.sum(e, axis=-1, keepdims=True)
    if approx_recip:
        p = e * pl.reciprocal(denom, approx=True)               # divide on EUP slot
    else:
        p = e / denom                                           # exact (f32 parity mode)
    o_ref[...] = p.astype(o_ref.dtype)


def _cdiv(a, b):
    return -(-a // b)


def _round_up(x, m):
    return _cdiv(x, m) * m


def _choose_batch_block(batch, seq, target_rows=2048):
    """Batch elements per grid step.

    * ~512-2048 flattened rows per step (top of the measured mem-bound band,
      also amortizes the ~0.35us per-step overhead); never chases the VMEM
      ceiling, so the footprint stays well under the 16 MiB v5e scoped default.
    * >= 2 grid steps whenever batch >= 16 so v7x's two TensorCores both get
      work via the "parallel" grid axis and input DMA overlaps compute.
    * bblk is a multiple of 8 or equal to the full batch, so the (bblk, seq)
      output block and (bblk*seq, D) input block always satisfy the
      (8,128)/full-dim BlockSpec rule (no illegal fallback blocks; a
      non-dividing tail is handled by pl.cdiv grid + masked edge blocks).
    """
    if batch < 16:
        return batch                                    # single full-batch step
    bblk = max(8, _round_up(max(1, target_rows // seq), 8))
    bblk = min(bblk, _round_up(_cdiv(batch, 2), 8))     # at least 2 grid steps
    return max(8, bblk)


def attn_forward(x, w1, b1, w2, b2=None, *, compute_dtype=jnp.bfloat16):
    """Pallas TPU equivalent of Attn.forward.  x: (B, T, D) -> (B, T, 1).

    compute_dtype: dtype x / w1 are fed to the MXU in.  bf16 (default) halves
    the dominant HBM read and is native on v5e/v6e/v7x MXUs; accumulation is
    always f32.  In a real model the upstream producer should emit bf16
    directly so the cast below fuses away.
    """
    B, T, D = x.shape
    nch = w1.shape[1]
    del b2  # softmax shift-invariance: a scalar added to every score cancels

    # Native layout: collapsing (B, T, D) -> (B*T, D) is a free metadata
    # reshape; no transpose of x is ever materialized in HBM.
    x2 = x.reshape(B * T, D).astype(compute_dtype)
    w1c = w1.astype(compute_dtype)                 # (D, nch), tiny
    b1r = b1.reshape(1, nch).astype(jnp.float32)   # added to the f32 accumulator
    w2r = w2.reshape(1, nch).astype(jnp.float32)

    bblk = _choose_batch_block(B, T)
    grid = (_cdiv(B, bblk),)
    exact = jnp.dtype(compute_dtype) == jnp.dtype(jnp.float32)

    x_spec_kwargs = {}
    if grid[0] > 1:
        # Mem-bound kernel with tiny per-step compute: keep the DMA engine busy
        # across step boundaries.
        x_spec_kwargs["pipeline_mode"] = pl.Buffered(3)
    x_spec = pl.BlockSpec((bblk * T, D), lambda i: (i, 0), **x_spec_kwargs)

    out2d = pl.pallas_call(
        functools.partial(attn_kernel, bblk=bblk, seq=T,
                          approx_recip=not exact),
        out_shape=jax.ShapeDtypeStruct((B, T), jnp.float32),
        grid_spec=pltpu.PrefetchScalarGridSpec(
            num_scalar_prefetch=0,
            grid=grid,
            in_specs=[
                x_spec,                                      # x rows, native layout
                pl.BlockSpec((D, nch), lambda i: (0, 0)),    # w1 (resident)
                pl.BlockSpec((1, nch), lambda i: (0, 0)),    # b1 row
                pl.BlockSpec((1, nch), lambda i: (0, 0)),    # w2 row
            ],
            out_specs=pl.BlockSpec((bblk, T), lambda i: (i, 0)),
        ),
        compiler_params=pltpu.CompilerParams(
            dimension_semantics=("parallel",)),
    )(x2, w1c, b1r, w2r)
    return out2d[..., None].astype(x.dtype)       # (B, T, 1), matches unsqueeze(2)


def attn_reference(x, w1, b1, w2, b2):
    B, T, D = x.shape
    h = jnp.maximum(x.reshape(-1, D) @ w1 + b1, 0.0)
    s = (h @ w2 + b2).reshape(B, T)
    return jax.nn.softmax(s, axis=1)[..., None]


if __name__ == "__main__":
    # Small shapes consistent with the module: batch=2, seq=8, input_sz=32, nch=24
    B, T, D, NCH = 2, 8, 32, 24
    key = jax.random.PRNGKey(0)
    kx, k1, k2, k3, k4 = jax.random.split(key, 5)

    x = jax.random.normal(kx, (B, T, D), dtype=jnp.float32)

    # Deterministic parameter init (mimicking nn.Linear's uniform fan-in init).
    bound1 = 1.0 / (D ** 0.5)
    w1 = jax.random.uniform(k1, (D, NCH), jnp.float32, -bound1, bound1)
    b1 = jax.random.uniform(k2, (1, NCH), jnp.float32, -bound1, bound1)
    bound2 = 1.0 / (NCH ** 0.5)
    w2 = jax.random.uniform(k3, (NCH, 1), jnp.float32, -bound2, bound2)
    b2 = jax.random.uniform(k4, (1, 1), jnp.float32, -bound2, bound2)

    ref = attn_reference(x, w1, b1, w2, b2)

    # f32 mode (exact division): bitwise-equivalent math path, 1e-5 parity.
    out_f32 = jax.block_until_ready(
        attn_forward(x, w1, b1, w2, b2, compute_dtype=jnp.float32))
    assert out_f32.shape == (B, T, 1)
    assert jnp.allclose(out_f32, ref, atol=1e-5, rtol=1e-5)

    # bf16 fast path (default): halves the dominant HBM read of x; checked at
    # bf16-appropriate tolerance (outputs are probabilities <= 1).
    out_bf16 = jax.block_until_ready(attn_forward(x, w1, b1, w2, b2))
    assert out_bf16.shape == (B, T, 1)
    assert jnp.allclose(out_bf16, ref, atol=2e-2, rtol=2e-2)

    print("KERNEL_OK")
</pallas_src>

<mosaic_0001>
module attributes {stable_mosaic.version = 11 : i64} {
  func.func @attn_kernel(%arg0: i32, %arg1: memref<16x32xf32, #tpu.memory_space<vmem>>, %arg2: memref<32x24xf32, #tpu.memory_space<vmem>>, %arg3: memref<1x24xf32, #tpu.memory_space<vmem>>, %arg4: memref<1x24xf32, #tpu.memory_space<vmem>>, %arg5: memref<2x8xf32, #tpu.memory_space<vmem>>) attributes {dimension_semantics = [#tpu.dimension_semantics<parallel>], iteration_bounds = array<i64: 1>, scalar_prefetch = 0 : i64, scratch_operands = 0 : i64, tpu.core_type = #tpu.core_type<tc>, window_params = [{transform_indices = @transform_0, window_bounds = array<i64: 16, 32>}, {pipeline_mode = #tpu.pipeline_mode<synchronous>, transform_indices = @transform_1, window_bounds = array<i64: 32, 24>}, {pipeline_mode = #tpu.pipeline_mode<synchronous>, transform_indices = @transform_2, window_bounds = array<i64: 1, 24>}, {pipeline_mode = #tpu.pipeline_mode<synchronous>, transform_indices = @transform_3, window_bounds = array<i64: 1, 24>}, {transform_indices = @transform_4, window_bounds = array<i64: 2, 8>}]} {
    %c0 = arith.constant 0 : index
    %c0_0 = arith.constant 0 : index
    %0 = vector.load %arg1[%c0, %c0_0] : memref<16x32xf32, #tpu.memory_space<vmem>>, vector<16x32xf32>
    %c0_1 = arith.constant 0 : index
    %c0_2 = arith.constant 0 : index
    %1 = vector.load %arg2[%c0_1, %c0_2] : memref<32x24xf32, #tpu.memory_space<vmem>>, vector<32x24xf32>
    %cst = arith.constant dense<0.000000e+00> : vector<16x24xf32>
    %2 = tpu.matmul %0, %1, %cst {dimension_numbers = #tpu.dot_dimension_numbers<[1], [0], [0], [1], [0, 0, 1, 1], [], []>} : vector<16x32xf32>, vector<32x24xf32>, vector<16x24xf32> -> vector<16x24xf32>
    %c0_3 = arith.constant 0 : index
    %c0_4 = arith.constant 0 : index
    %3 = vector.load %arg3[%c0_3, %c0_4] : memref<1x24xf32, #tpu.memory_space<vmem>>, vector<1x24xf32>
    %4 = vector.broadcast %3 : vector<1x24xf32> to vector<16x24xf32>
    %5 = arith.addf %2, %4 : vector<16x24xf32>
    %cst_5 = arith.constant 0.000000e+00 : f32
    %6 = vector.broadcast %cst_5 : f32 to vector<16x24xf32>
    %7 = arith.maximumf %5, %6 : vector<16x24xf32>
    %c0_6 = arith.constant 0 : index
    %c0_7 = arith.constant 0 : index
    %8 = vector.load %arg4[%c0_6, %c0_7] : memref<1x24xf32, #tpu.memory_space<vmem>>, vector<1x24xf32>
    %9 = vector.broadcast %8 : vector<1x24xf32> to vector<16x24xf32>
    %10 = arith.mulf %7, %9 : vector<16x24xf32>
    %cst_8 = arith.constant dense<0.000000e+00> : vector<16xf32>
    %11 = vector.multi_reduction <add>, %10, %cst_8 [1] : vector<16x24xf32> to vector<16xf32>
    %12 = vector.shape_cast %11 : vector<16xf32> to vector<16x1xf32>
    %13 = vector.shape_cast %12 : vector<16x1xf32> to vector<2x8xf32>
    %cst_9 = arith.constant dense<0xFF800000> : vector<2xf32>
    %14 = vector.multi_reduction <maximumf>, %13, %cst_9 [1] : vector<2x8xf32> to vector<2xf32>
    %15 = vector.shape_cast %14 : vector<2xf32> to vector<2x1xf32>
    %16 = vector.broadcast %15 : vector<2x1xf32> to vector<2x8xf32>
    %17 = arith.subf %13, %16 : vector<2x8xf32>
    %18 = math.exp %17 : vector<2x8xf32>
    %cst_10 = arith.constant dense<0.000000e+00> : vector<2xf32>
    %19 = vector.multi_reduction <add>, %18, %cst_10 [1] : vector<2x8xf32> to vector<2xf32>
    %20 = vector.shape_cast %19 : vector<2xf32> to vector<2x1xf32>
    %21 = vector.broadcast %20 : vector<2x1xf32> to vector<2x8xf32>
    %22 = arith.divf %18, %21 : vector<2x8xf32>
    %c0_11 = arith.constant 0 : index
    %c0_12 = arith.constant 0 : index
    %23 = vector.load %arg5[%c0_11, %c0_12] : memref<2x8xf32, #tpu.memory_space<vmem>>, vector<2x8xf32>
    tpu.vector_store %arg5[%c0_11, %c0_12], %22 {strides = array<i32>} : memref<2x8xf32, #tpu.memory_space<vmem>>, vector<2x8xf32>,
    return
  }
  func.func @transform_0(%arg0: i32) -> (i32, i32) {
    %c0_i32 = arith.constant 0 : i32
    %c0_i32_0 = arith.constant 0 : i32
    return %arg0, %c0_i32 : i32, i32
  }
  func.func @transform_1(%arg0: i32) -> (i32, i32) {
    %c0_i32 = arith.constant 0 : i32
    %c0_i32_0 = arith.constant 0 : i32
    %c0_i32_1 = arith.constant 0 : i32
    return %c0_i32, %c0_i32_0 : i32, i32
  }
  func.func @transform_2(%arg0: i32) -> (i32, i32) {
    %c0_i32 = arith.constant 0 : i32
    %c0_i32_0 = arith.constant 0 : i32
    %c0_i32_1 = arith.constant 0 : i32
    return %c0_i32, %c0_i32_0 : i32, i32
  }
  func.func @transform_3(%arg0: i32) -> (i32, i32) {
    %c0_i32 = arith.constant 0 : i32
    %c0_i32_0 = arith.constant 0 : i32
    %c0_i32_1 = arith.constant 0 : i32
    return %c0_i32, %c0_i32_0 : i32, i32
  }
  func.func @transform_4(%arg0: i32) -> (i32, i32) {
    %c0_i32 = arith.constant 0 : i32
    %c0_i32_0 = arith.constant 0 : i32
    return %arg0, %c0_i32 : i32, i32
  }
}

</mosaic_0001>

<bundles_post_ra>
// kernel: tpu_custom_call.1
= control target key start
LH: loop header
LB: loop body
LE: loop exit
PB: predicated region body
PF: predicated region fallthrough
CT: control target
= control target key end

     0   :  { %vm31_vm0 = vcmask 261120   ;;  %s370_s0 = inlined_call_operand.vmem [shape: f32[16,32], index: 0, kind: input, shape index: {}]   ;;  %s371_s1 = inlined_call_operand.vmem [shape: f32[32,24], index: 1, kind: input, shape index: {}]   ;;  %s372_s2 = inlined_call_operand.vmem [shape: f32[1,24], index: 2, kind: input, shape index: {}]   ;;  %s373_s3 = inlined_call_operand.vmem [shape: f32[1,24], index: 3, kind: input, shape index: {}]   ;;  %s374_s4 = inlined_call_operand.hbm [shape: f32[2,8], index: 4, kind: output, shape index: {}]  }
   0x1   :  { %v20_v0 = vld [vmem:[%s371_s1] sm:$0xff]  ;;  %v21_v1 = vld [vmem:[%s371_s1 + $0x8] sm:$0xff]  ;;  %v22_v2 = vld [vmem:[%s371_s1 + $0x10] sm:$0xff] }
   0x2   :  { %v257_v3 = vpack.c.bf16 %v21_v1, %v20_v0  ;;  %v23_v4 = vld [vmem:[%s371_s1 + $0x18] sm:$0xff]  ;;  %v18_v5 = vld [vmem:[%s370_s0] sm:$0xff] }
   0x3   :  { %v261_v6 = vpack.c.bf16 %v23_v4, %v22_v2  ;;  %254 = vmatprep.mubr.msk.f32.mxu0 %vm31_vm0, %v18_v5 }
   0x4   :  { %9 = vsyncpa [#allocation3], 0  ;;  %258 = vmatprep.subr.bf16.mxu0 %v257_v3  ;;  %v19_v7 = vld [vmem:[%s370_s0 + $0x8] sm:$0xff]  ;;  %v236_v8 = vld [vmem:[%s372_s2] ss:$0 sm:$0xff]  ;;  %vm124_vm1 = vcmask 195584   ;;  %v133_v20 = vlaneseq }
   0x5   :  { %260 = vmatpush3.bf16.msra.mxu0 %v257_v3  ;;  %v239_v13 = vld [vmem:[%s373_s3] ss:$0 sm:$0xff]  ;;  %vm143_vm2 = vcmask 1041409   ;;  %vm146_vm3 = vcmask 58368   ;;  %v301_v30 = vmov 0   ;;  %s302_s0 = smov [#allocation2]  }
   0x6   :  { %262 = vmatprep.subr.bf16.mxu0 %v261_v6  ;;  %v134_v21 = vand.u32 127, %v133_v20  ;;  %v136_v22 = vshrl.u32 %v133_v20, 7  ;;  %268 = vset.pattern.permute.xlu0 %v301_v30  ;;  %s228_s2 = sshll.u32 %s302_s0, 4  ;;  %s229_s2 = int_to_ptr.vmem [resolvable:$true] %s228_s2 }
   0x7   :  { %267 = vset.pattern.permute.xlu1 %v301_v30  ;;  %s277_s3 = scalar_lea.vmem %s229_s2, 32  ;;  %p282_p1 = scmp.lt.s32.totalorder %s229_s2, %s229_s2 }
   0x8   :  { %v137_v24 = vsub.s32 %v134_v21, %v136_v22  ;;  %v153_v31 = vsub.s32 0, %v136_v22  ;;  %v157_v32 = vsub.s32 1, %v136_v22  ;;  %p278_p0 = scmp.ne.s32.totalorder %s229_s2, %s277_s3  ;;  %p283_p2 = scmp.lt.s32.totalorder %s277_s3, %s277_s3 }
   0x9   :  { %264 = vmatpush3.bf16.msra.mxu0 %v261_v6 }
   0xa   :  { %p284_p3 = por %p283_p2, %p282_p1 }
   0xc   :  { %255 = vmatmul.mubr.msk.f32.vlgmr.msra.gmra.mrb[0].mxu0 %vm31_vm0, %v19_v7  ;;  %p285_p4 = pnand %p284_p3, %p278_p0 }
  0xdf   :  { %v256_v9 = vpop.f32.mrb[0].mxu0 }
  0xe0   :  { %v110_v10 = vadd.f32 %v256_v9, %v236_v8  ;;  %v104_v11 = vpop.f32.mrb[1].mxu0 }
  0xe1   :  { %v105_v12 = vadd.f32 %v236_v8, %v104_v11 }
  0xe2   :  { %v114_v14 = vmax.f32 %v110_v10, 0.0 }
  0xe3   :  { %v113_v15 = vmax.f32 %v105_v12, 0.0 }
  0xe4   :  { %v123_v18 = vmul.f32 %v239_v13, %v114_v14 }
  0xe5   :  { %v122_v16 = vmul.f32 %v239_v13, %v113_v15 }
  0xe6   :  { %v128_v19 = vsel %vm124_vm1, %v123_v18, 0.0 }
  0xe7   :  { %v125_v17 = vsel %vm124_vm1, %v122_v16, 0.0 }
  0xe8   :  { %126 = vadd.xlane.f32.xlu0 %v125_v17 }
  0xec   :  { %129 = vadd.xlane.f32.xlu0 %v128_v19 }
 0x175   :  { %v127_v23 = vpop.xlane.xlu0 %126 }
 0x176   :  { %v138_v26 = vrot.slane %v127_v23, %v137_v24 }
 0x179   :  { %v130_v25 = vpop.xlane.xlu0 %129 }
 0x17a   :  { %v142_v27 = vrot.slane %v130_v25, %v137_v24 }
 0x17c   :  { %v144_v28 = vsel %vm143_vm2, %v142_v27, %v138_v26 }
 0x17d   :  { %v147_v29 = vsel %vm146_vm3, %v144_v28, -inf }
 0x17e   :  { %148 = vmax.xlane.f32.xlu1 %v147_v29 }
 0x20b   :  { %v149_v33 = vpop.xlane.xlu1 %148 }
 0x20c   :  { %v154_v34 = vrot.slane %v149_v33, %v153_v31  ;;  %v158_v35 = vrot.slane %v149_v33, %v157_v32 }
 0x20e   :  { %v161_v36 = vsub.f32 %v127_v23, %v154_v34  ;;  %v162_v37 = vsub.f32 %v130_v25, %v158_v35 }
 0x210   :  { %v163_v38 = vmul.f32 1.442695, %v161_v36  ;;  %v165_v39 = vmul.f32 1.442695, %v162_v37 }
 0x212   :  { %269 = vpow2.f32 %v163_v38 }
 0x213   :  { %271 = vpow2.f32 %v165_v39 }
 0x21c   :  { %v270_v40 = vpop.eup %269 }
 0x21d   :  { %v272_v41 = vpop.eup %271  ;;  %170 = vperm.xlu1 %267, %v270_v40  }
 0x21e   :  { %173 = vperm.xlu0 %268, %v272_v41  }
 0x29c   :  { %v171_v42 = vpop.permute.xlu1 %170 }
 0x29d   :  { %v174_v43 = vpop.permute.xlu0 %173  ;;  %v178_v44 = vrot.slane %v171_v42, %v137_v24 }
 0x29e   :  { %v182_v45 = vrot.slane %v174_v43, %v137_v24 }
 0x2a0   :  { %v183_v46 = vsel %vm143_vm2, %v182_v45, %v178_v44 }
 0x2a1   :  { %v185_v47 = vsel %vm146_vm3, %v183_v46, 0.0 }
 0x2a2   :  { %186 = vadd.xlane.f32.xlu1 %v185_v47 }
 0x32f   :  { %v187_v48 = vpop.xlane.xlu1 %186 }
 0x330   :  { %v192_v49 = vrot.slane %v187_v48, %v153_v31  ;;  %v196_v50 = vrot.slane %v187_v48, %v157_v32 }
 0x332   :  { %273 = vrcp.f32 %v192_v49 }
 0x333   :  { %275 = vrcp.f32 %v196_v50 }
 0x33c   :  { %v274_v51 = vpop.eup %273 }
 0x33d   :  { %v200_v52 = vmul.f32 %v274_v51, %v270_v40  ;;  %v276_v53 = vpop.eup %275 }
 0x33e   :  { %v202_v54 = vmul.f32 %v276_v53, %v272_v41 }
 0x33f   :  { %206 = vperm.xlu0 %268, %v200_v52  }
 0x343   :  { %209 = vperm.xlu0 %268, %v202_v54  }
 0x3be   :  { %v207_v55 = vpop.permute.xlu0 %206 }
 0x3bf   :  { %v214_v57 = vrot.slane %v207_v55, %v137_v24 }
 0x3c2   :  { %v210_v56 = vpop.permute.xlu0 %209 }
 0x3c3   :  { %v218_v58 = vrot.slane %v210_v56, %v137_v24 }
 0x3c5   :  { %v219_v59 = vsel %vm143_vm2, %v218_v58, %v214_v57 }
 0x3c6   :  { %221 = vst.msk [vmem:[#allocation2] sm:$0x3] %vm146_vm3, %v219_v59 }
 0x3c7   :  { %288 = shalt.err (!%p285_p4)
}
 0x3c8   :  { %s289_s6 = scalar_lea.hbm %s374_s4, 32 }
 0x3c9   :  { %p290_p5 = scmp.ne.s32.totalorder %s374_s4, %s289_s6  ;;  %p293_p6 = scmp.lt.u32.totalorder %s289_s6, %s374_s4 }
 0x3cb   :  { %p295_p7 = pnand %p293_p6, %p290_p5 }
 0x3cd   :  { %298 = shalt.err (!%p295_p7)
}
 0x3ce   :  { %231 = dma.vmem_to_hbm [thread:$0]  %s229_s2, 32, %s374_s4, [#allocation3]  }
 0x3cf   :  { %299 = dma.done.wait [#allocation3], 32  }
 0x3d0   :  { %300 = vsyncadd [#allocation3], 4294967264 }
 0x3d1   :  { %235 = vsyncpa [#allocation3], 1 }

</bundles_post_ra>
